<compile_context>
chip_gen: v5e
topology: v5e:2x2
jax: 0.10.0
libtpu: 0.0.40
codegen_flags: <defaults>
</compile_context>

<pallas_src>
import functools

import jax
import jax.numpy as jnp
from jax.experimental import pallas as pl
from jax.experimental.pallas import tpu as pltpu


def _round_up(x, m):
    return ((x + m - 1) // m) * m


# ---------------------------------------------------------------------------
# Kernel 1: one-shot layers 1-2  ->  h2 = PReLU(PReLU(x@w1+b1)@w2+b2), bf16.
# ---------------------------------------------------------------------------
def _hidden_kernel(x_ref, w1_ref, b1_ref, a1_ref, w2_ref, b2_ref, a2_ref,
                   h2_ref):
    h1 = jnp.dot(x_ref[...], w1_ref[...],
                 preferred_element_type=jnp.float32) + b1_ref[...]
    a1 = a1_ref[0]                       # scalar read from SMEM
    h1 = jnp.where(h1 > 0, h1, a1 * h1)

    h2 = jnp.dot(h1.astype(jnp.bfloat16), w2_ref[...],
                 preferred_element_type=jnp.float32) + b2_ref[...]
    a2 = a2_ref[0]
    h2 = jnp.where(h2 > 0, h2, a2 * h2)
    h2_ref[...] = h2.astype(h2_ref.dtype)


# ---------------------------------------------------------------------------
# Kernel 2: w3-streaming layer 3.  One grid step = one contiguous w3 tile.
# ---------------------------------------------------------------------------
def _stream_kernel(h2_ref, w3_ref, b3_ref, o_ref):
    o_ref[...] = (jnp.dot(h2_ref[...], w3_ref[...],
                          preferred_element_type=jnp.float32)
                  + b3_ref[...]).astype(o_ref.dtype)


def _stream_vmem_limit(b_pad, h2d, tn):
    """VMEM limit derived from the actual double-buffered tile sizes."""
    need = 2 * (h2d * tn * 2          # w3 tile (bf16)
                + tn * 4              # b3 tile (f32)
                + b_pad * tn * 4      # out tile (f32)
                + b_pad * h2d * 2)    # resident h2 (bf16)
    return int(min(40 << 20, max(16 << 20, need + (2 << 20))))


@functools.partial(jax.jit, static_argnames=("n_points",))
def decoder_point_cloud_forward(features, params, *, n_points):
    """Run the decoder.  `params` must come from prepare_params_for_kernel."""
    w1, b1, a1, w2, b2, a2, w3t, b3t = params
    features = features.astype(jnp.float32)
    b, fd = features.shape
    h1d = w1.shape[1]
    h2d = w2.shape[1]
    n_tiles, _, tn = w3t.shape
    out_pad = n_tiles * tn

    # Pad batch to a sublane-friendly size and cast to bf16 once, outside the
    # grid (avoids per-step re-casting of the resident operand).
    b_pad = 8 if b <= 8 else _round_up(b, 16)
    x = jnp.pad(features, ((0, b_pad - b), (0, 0))).astype(jnp.bfloat16)

    vmem = pltpu.MemorySpace.VMEM
    smem = pltpu.MemorySpace.SMEM

    # ---- layers 1-2: single invocation, everything resident in VMEM --------
    h2 = pl.pallas_call(
        _hidden_kernel,
        out_shape=jax.ShapeDtypeStruct((b_pad, h2d), jnp.bfloat16),
        in_specs=[
            pl.BlockSpec(memory_space=vmem),   # x
            pl.BlockSpec(memory_space=vmem),   # w1
            pl.BlockSpec(memory_space=vmem),   # b1
            pl.BlockSpec(memory_space=smem),   # a1 (PReLU slope, scalar)
            pl.BlockSpec(memory_space=vmem),   # w2
            pl.BlockSpec(memory_space=vmem),   # b2
            pl.BlockSpec(memory_space=smem),   # a2 (PReLU slope, scalar)
        ],
        out_specs=pl.BlockSpec(memory_space=vmem),
    )(x, w1, b1, a1, w2, b2, a2)

    # ---- layer 3: stream tile-major w3 over a 1-D grid ---------------------
    flat = pl.pallas_call(
        _stream_kernel,
        out_shape=jax.ShapeDtypeStruct((b_pad, out_pad), jnp.float32),
        grid_spec=pltpu.PrefetchScalarGridSpec(
            num_scalar_prefetch=0,
            grid=(n_tiles,),
            in_specs=[
                pl.BlockSpec((b_pad, h2d), lambda j: (0, 0)),        # h2 (resident)
                pl.BlockSpec((None, h2d, tn), lambda j: (j, 0, 0)),  # w3 tile (contiguous slab)
                pl.BlockSpec((None, 1, tn), lambda j: (j, 0, 0)),    # b3 tile
            ],
            out_specs=pl.BlockSpec((b_pad, tn), lambda j: (0, j)),
        ),
        compiler_params=pltpu.CompilerParams(
            dimension_semantics=("parallel",),   # w3 tiles are independent
            vmem_limit_bytes=_stream_vmem_limit(b_pad, h2d, tn)),
    )(h2, w3t, b3t)

    out_dim = 3 * n_points
    return flat[:b, :out_dim].reshape((-1, n_points, 3))


def init_decoder_params(key, features_d, hidden1, hidden2, n_points):
    """PyTorch-style init: Linear U(-1/sqrt(fan_in), ..), PReLU slope 0.25.
    Weights stored pre-transposed as (in, out), f32."""
    ks = jax.random.split(key, 6)

    def linear(kw, kb, fan_in, fan_out):
        bound = 1.0 / float(fan_in) ** 0.5
        w = jax.random.uniform(kw, (fan_in, fan_out), jnp.float32, -bound, bound)
        b = jax.random.uniform(kb, (1, fan_out), jnp.float32, -bound, bound)
        return w, b

    w1, b1 = linear(ks[0], ks[1], features_d, hidden1)
    w2, b2 = linear(ks[2], ks[3], hidden1, hidden2)
    w3, b3 = linear(ks[4], ks[5], hidden2, 3 * n_points)
    a1 = jnp.full((1,), 0.25, jnp.float32)   # PReLU default slope
    a2 = jnp.full((1,), 0.25, jnp.float32)
    return (w1, b1, a1, w2, b2, a2, w3, b3)


def prepare_params_for_kernel(params, n_points, tn_max=1024):
    """One-time prep (outside jit):
      * cast weights to bf16 (biases / PReLU slopes stay f32);
      * zero-pad layer-3 output columns to a 128-aligned tile width tn and
        re-lay-out w3/b3 tile-major -> (n_tiles, hidden2, tn) so each grid
        step DMAs one fully contiguous HBM slab."""
    w1, b1, a1, w2, b2, a2, w3, b3 = params
    h2d, out_dim = w3.shape
    assert out_dim == 3 * n_points, (out_dim, n_points)
    tn = min(tn_max, _round_up(out_dim, 128))
    out_pad = _round_up(out_dim, tn)
    n_tiles = out_pad // tn
    pad = out_pad - out_dim
    w3p = jnp.pad(w3, ((0, 0), (0, pad)))
    b3p = jnp.pad(b3, ((0, 0), (0, pad)))
    # Tile-major relayout: w3t[j, :, :] == w3p[:, j*tn:(j+1)*tn]
    w3t = w3p.reshape(h2d, n_tiles, tn).transpose(1, 0, 2).astype(jnp.bfloat16)
    b3t = b3p.reshape(1, n_tiles, tn).transpose(1, 0, 2).astype(jnp.float32)
    return (w1.astype(jnp.bfloat16), b1.astype(jnp.float32), a1,
            w2.astype(jnp.bfloat16), b2.astype(jnp.float32), a2,
            w3t, b3t)


def reference_forward(features, params_f32, n_points):
    """Pure-JAX reference with the same precision scheme as the kernel
    (bf16 weights/activations, f32 accumulation, f32 bias/PReLU).
    NOTE: bf16 activations deviate slightly from PyTorch's full-f32 Linear
    semantics; the 1e-2 tolerance reflects this documented choice."""
    w1, b1, a1, w2, b2, a2, w3, b3 = params_f32
    x = features.astype(jnp.bfloat16)
    h = jnp.dot(x, w1.astype(jnp.bfloat16),
                preferred_element_type=jnp.float32) + b1
    h = jnp.where(h > 0, h, a1[0] * h)
    h = jnp.dot(h.astype(jnp.bfloat16), w2.astype(jnp.bfloat16),
                preferred_element_type=jnp.float32) + b2
    h = jnp.where(h > 0, h, a2[0] * h)
    h = jnp.dot(h.astype(jnp.bfloat16), w3.astype(jnp.bfloat16),
                preferred_element_type=jnp.float32) + b3
    return h.reshape((-1, n_points, 3))


if __name__ == "__main__":
    # Small shapes consistent with the module structure (scaled-down widths).
    # n_points chosen so 3*n_points is NOT a multiple of the tile width,
    # exercising lane padding and the multi-tile streaming grid.
    batch = 2
    features_d = 128
    hidden1 = 256
    hidden2 = 512
    n_points = 200        # out_dim = 600 -> padded to 768 -> 3 tiles of 256

    key = jax.random.PRNGKey(0)
    k_params, k_x = jax.random.split(key)
    params_f32 = init_decoder_params(k_params, features_d, hidden1, hidden2,
                                     n_points)
    # tn_max=256 here to exercise the multi-tile streaming path at small size
    # (production default is 1024).
    params = prepare_params_for_kernel(params_f32, n_points, tn_max=256)
    features = jax.random.normal(k_x, (batch, features_d), jnp.float32)

    out = decoder_point_cloud_forward(features, params, n_points=n_points)
    out = jax.block_until_ready(out)

    assert out.shape == (batch, n_points, 3), out.shape

    ref = reference_forward(features, params_f32, n_points)
    max_err = float(jnp.max(jnp.abs(out - ref)))
    assert jnp.allclose(out, ref, atol=1e-2, rtol=1e-2), max_err

    print("KERNEL_OK")
</pallas_src>

<mosaic_0001>
module attributes {stable_mosaic.version = 11 : i64} {
  func.func @_hidden_kernel(%arg0: memref<8x128xbf16, #tpu.memory_space<vmem>>, %arg1: memref<128x256xbf16, #tpu.memory_space<vmem>>, %arg2: memref<1x256xf32, #tpu.memory_space<vmem>>, %arg3: memref<1xf32, #tpu.memory_space<smem>>, %arg4: memref<256x512xbf16, #tpu.memory_space<vmem>>, %arg5: memref<1x512xf32, #tpu.memory_space<vmem>>, %arg6: memref<1xf32, #tpu.memory_space<smem>>, %arg7: memref<8x512xbf16, #tpu.memory_space<vmem>>) attributes {dimension_semantics = [], scalar_prefetch = 0 : i64, scratch_operands = 0 : i64, tpu.core_type = #tpu.core_type<tc>} {
    %c0 = arith.constant 0 : index
    %c0_0 = arith.constant 0 : index
    %0 = vector.load %arg0[%c0, %c0_0] : memref<8x128xbf16, #tpu.memory_space<vmem>>, vector<8x128xbf16>
    %c0_1 = arith.constant 0 : index
    %c0_2 = arith.constant 0 : index
    %1 = vector.load %arg1[%c0_1, %c0_2] : memref<128x256xbf16, #tpu.memory_space<vmem>>, vector<128x256xbf16>
    %cst = arith.constant dense<0.000000e+00> : vector<8x256xf32>
    %2 = tpu.matmul %0, %1, %cst {dimension_numbers = #tpu.dot_dimension_numbers<[1], [0], [0], [1], [0, 0, 1, 1], [], []>} : vector<8x128xbf16>, vector<128x256xbf16>, vector<8x256xf32> -> vector<8x256xf32>
    %c0_3 = arith.constant 0 : index
    %c0_4 = arith.constant 0 : index
    %3 = vector.load %arg2[%c0_3, %c0_4] : memref<1x256xf32, #tpu.memory_space<vmem>>, vector<1x256xf32>
    %4 = vector.broadcast %3 : vector<1x256xf32> to vector<8x256xf32>
    %5 = arith.addf %2, %4 : vector<8x256xf32>
    %c0_5 = arith.constant 0 : index
    %6 = memref.load %arg3[%c0_5] : memref<1xf32, #tpu.memory_space<smem>>
    %cst_6 = arith.constant 0.000000e+00 : f32
    %7 = vector.broadcast %cst_6 : f32 to vector<8x256xf32>
    %8 = arith.cmpf ogt, %5, %7 : vector<8x256xf32>
    %9 = vector.broadcast %6 : f32 to vector<8x256xf32>
    %10 = arith.mulf %9, %5 : vector<8x256xf32>
    %11 = arith.select %8, %5, %10 : vector<8x256xi1>, vector<8x256xf32>
    %12 = arith.truncf %11 : vector<8x256xf32> to vector<8x256xbf16>
    %c0_7 = arith.constant 0 : index
    %c0_8 = arith.constant 0 : index
    %13 = vector.load %arg4[%c0_7, %c0_8] : memref<256x512xbf16, #tpu.memory_space<vmem>>, vector<256x512xbf16>
    %cst_9 = arith.constant dense<0.000000e+00> : vector<8x512xf32>
    %14 = tpu.matmul %12, %13, %cst_9 {dimension_numbers = #tpu.dot_dimension_numbers<[1], [0], [0], [1], [0, 0, 1, 1], [], []>} : vector<8x256xbf16>, vector<256x512xbf16>, vector<8x512xf32> -> vector<8x512xf32>
    %c0_10 = arith.constant 0 : index
    %c0_11 = arith.constant 0 : index
    %15 = vector.load %arg5[%c0_10, %c0_11] : memref<1x512xf32, #tpu.memory_space<vmem>>, vector<1x512xf32>
    %16 = vector.broadcast %15 : vector<1x512xf32> to vector<8x512xf32>
    %17 = arith.addf %14, %16 : vector<8x512xf32>
    %c0_12 = arith.constant 0 : index
    %18 = memref.load %arg6[%c0_12] : memref<1xf32, #tpu.memory_space<smem>>
    %cst_13 = arith.constant 0.000000e+00 : f32
    %19 = vector.broadcast %cst_13 : f32 to vector<8x512xf32>
    %20 = arith.cmpf ogt, %17, %19 : vector<8x512xf32>
    %21 = vector.broadcast %18 : f32 to vector<8x512xf32>
    %22 = arith.mulf %21, %17 : vector<8x512xf32>
    %23 = arith.select %20, %17, %22 : vector<8x512xi1>, vector<8x512xf32>
    %24 = arith.truncf %23 : vector<8x512xf32> to vector<8x512xbf16>
    %c0_14 = arith.constant 0 : index
    %c0_15 = arith.constant 0 : index
    %25 = vector.load %arg7[%c0_14, %c0_15] : memref<8x512xbf16, #tpu.memory_space<vmem>>, vector<8x512xbf16>
    tpu.vector_store %arg7[%c0_14, %c0_15], %24 {strides = array<i32>} : memref<8x512xbf16, #tpu.memory_space<vmem>>, vector<8x512xbf16>,
    return
  }
}

module attributes {stable_mosaic.version = 11 : i64} {
  func.func @_stream_kernel(%arg0: i32, %arg1: memref<8x512xbf16, #tpu.memory_space<vmem>>, %arg2: memref<1x512x256xbf16, #tpu.memory_space<vmem>>, %arg3: memref<1x1x256xf32, #tpu.memory_space<vmem>>, %arg4: memref<8x256xf32, #tpu.memory_space<vmem>>) attributes {dimension_semantics = [#tpu.dimension_semantics<parallel>], iteration_bounds = array<i64: 3>, scalar_prefetch = 0 : i64, scratch_operands = 0 : i64, tpu.core_type = #tpu.core_type<tc>, window_params = [{pipeline_mode = #tpu.pipeline_mode<synchronous>, transform_indices = @transform_0, window_bounds = array<i64: 8, 512>}, {transform_indices = @transform_1, window_bounds = array<i64: 1, 512, 256>}, {transform_indices = @transform_2, window_bounds = array<i64: 1, 1, 256>}, {transform_indices = @transform_3, window_bounds = array<i64: 8, 256>}]} {
    %c0 = arith.constant 0 : index
    %c0_0 = arith.constant 0 : index
    %0 = vector.load %arg1[%c0, %c0_0] : memref<8x512xbf16, #tpu.memory_space<vmem>>, vector<8x512xbf16>
    %c0_1 = arith.constant 0 : index
    %c0_2 = arith.constant 0 : index
    %c0_3 = arith.constant 0 : index
    %1 = vector.load %arg2[%c0_1, %c0_2, %c0_3] : memref<1x512x256xbf16, #tpu.memory_space<vmem>>, vector<1x512x256xbf16>
    %2 = vector.shape_cast %1 : vector<1x512x256xbf16> to vector<512x256xbf16>
    %cst = arith.constant dense<0.000000e+00> : vector<8x256xf32>
    %3 = tpu.matmul %0, %2, %cst {dimension_numbers = #tpu.dot_dimension_numbers<[1], [0], [0], [1], [0, 0, 1, 1], [], []>} : vector<8x512xbf16>, vector<512x256xbf16>, vector<8x256xf32> -> vector<8x256xf32>
    %c0_4 = arith.constant 0 : index
    %c0_5 = arith.constant 0 : index
    %c0_6 = arith.constant 0 : index
    %4 = vector.load %arg3[%c0_4, %c0_5, %c0_6] : memref<1x1x256xf32, #tpu.memory_space<vmem>>, vector<1x1x256xf32>
    %5 = vector.shape_cast %4 : vector<1x1x256xf32> to vector<1x256xf32>
    %6 = vector.broadcast %5 : vector<1x256xf32> to vector<8x256xf32>
    %7 = arith.addf %3, %6 : vector<8x256xf32>
    %c0_7 = arith.constant 0 : index
    %c0_8 = arith.constant 0 : index
    %8 = vector.load %arg4[%c0_7, %c0_8] : memref<8x256xf32, #tpu.memory_space<vmem>>, vector<8x256xf32>
    tpu.vector_store %arg4[%c0_7, %c0_8], %7 {strides = array<i32>} : memref<8x256xf32, #tpu.memory_space<vmem>>, vector<8x256xf32>,
    return
  }
  func.func @transform_0(%arg0: i32) -> (i32, i32) {
    %c0_i32 = arith.constant 0 : i32
    %c0_i32_0 = arith.constant 0 : i32
    %c0_i32_1 = arith.constant 0 : i32
    return %c0_i32, %c0_i32_0 : i32, i32
  }
  func.func @transform_1(%arg0: i32) -> (i32, i32, i32) {
    %c0_i32 = arith.constant 0 : i32
    %c0_i32_0 = arith.constant 0 : i32
    %c0_i32_1 = arith.constant 0 : i32
    return %arg0, %c0_i32, %c0_i32_0 : i32, i32, i32
  }
  func.func @transform_2(%arg0: i32) -> (i32, i32, i32) {
    %c0_i32 = arith.constant 0 : i32
    %c0_i32_0 = arith.constant 0 : i32
    %c0_i32_1 = arith.constant 0 : i32
    return %arg0, %c0_i32, %c0_i32_0 : i32, i32, i32
  }
  func.func @transform_3(%arg0: i32) -> (i32, i32) {
    %c0_i32 = arith.constant 0 : i32
    %c0_i32_0 = arith.constant 0 : i32
    return %c0_i32, %arg0 : i32, i32
  }
}

</mosaic_0001>

<bundles_post_ra>
// kernel: decoder_point_cloud_forward.2
= control target key start
LH: loop header
LB: loop body
LE: loop exit
PB: predicated region body
PF: predicated region fallthrough
CT: control target
= control target key end

     0   :  { %14 = vsyncpa [#allocation5], 0  ;;  %s1252_s0 = inlined_call_operand.vmem [shape: bf16[8,128], index: 0, kind: input, shape index: {}]   ;;  %s1253_s1 = inlined_call_operand.hbm [shape: bf16[128,256], index: 1, kind: input, shape index: {}]   ;;  %s1254_s2 = inlined_call_operand.vmem [shape: f32[1,256], index: 2, kind: input, shape index: {}]   ;;  %s1255_s3 = inlined_call_operand.<no memory space> [shape: f32[1], index: 3, kind: input, shape index: {}]   ;;  %s1256_s4 = inlined_call_operand.hbm [shape: bf16[256,512], index: 4, kind: input, shape index: {}]   ;;  %s1257_s5 = inlined_call_operand.vmem [shape: f32[1,512], index: 5, kind: input, shape index: {}]   ;;  %s1258_s6 = inlined_call_operand.<no memory space> [shape: f32[1], index: 6, kind: input, shape index: {}]   ;;  %s1259_s7 = inlined_call_operand.vmem [shape: bf16[8,512], index: 7, kind: output, shape index: {}]  }
   0x1   :  { %s22_s26 = sshll.u32 %s1253_s1, 4  ;;  %s23_s26 = int_to_ptr.hbm [resolvable:$true] %s22_s26 }
   0x2   :  { %15 = vsyncpa [#allocation7], 0  ;;  %s1179_s27 = smov [#allocation4]   ;;  %s39_s8 = sshll.u32 %s1256_s4, 4  ;;  %s40_s8 = int_to_ptr.hbm [resolvable:$true] %s39_s8 }
   0x3   :  { %s24_s28 = sshll.u32 %s1179_s27, 4  ;;  %s1180_s9 = smov 128   ;;  %s25_s28 = int_to_ptr.vmem [resolvable:$true] %s24_s28 }
   0x4   :  { %s1181_s10 = smov 8   ;;  %s1182_s11 = smov [#allocation6]  }
   0x5   :  { %30 = dma.hbm_to_vmem [thread:$0]  %s23_s26, 2048, %s25_s28, [#allocation5], %s1180_s9, %s1180_s9, %s1181_s10  }
   0x6   :  { %s41_s12 = sshll.u32 %s1182_s11, 4  ;;  %s1183_s13 = smov 256   ;;  %s42_s12 = int_to_ptr.vmem [resolvable:$true] %s41_s12 }
   0x7   :  { %s1184_s14 = smov 16  }
   0x8   :  { %47 = dma.hbm_to_vmem [thread:$0]  %s40_s8, 8192, %s42_s12, [#allocation7], %s1183_s13, %s1183_s13, %s1184_s14  }
   0x9   :  { %1175 = dma.done.wait [#allocation5], 2048  }
   0xa   :  { %1176 = vsyncadd [#allocation5], 4294965248 }
   0xb   :  { %1177 = dma.done.wait [#allocation7], 8192  }
   0xc   :  { %1178 = vsyncadd [#allocation7], 4294959104  ;;  %v779_v0 = vld [vmem:[#allocation4 + $0x70] sm:$0xf]  ;;  %v1056_v1 = vld [vmem:[#allocation4 + $0x74] sm:$0xf0] }
   0xd   :  { %v1055_v2 = vld [vmem:[#allocation4 + $0x74] sm:$0xf]  ;;  %v780_v3 = vor.u32 %v1056_v1, %v779_v0  ;;  %v781_v4 = vld [vmem:[#allocation4 + $0x78] sm:$0xf0]  ;;  %v771_v5 = vld [vmem:[#allocation4 + $0x60] sm:$0xf] }
   0xe   :  { %v1054_v6 = vld [vmem:[#allocation4 + $0x64] sm:$0xf0]  ;;  %v784_v7 = vor.u32 %v1055_v2, %v781_v4  ;;  %v1053_v8 = vld [vmem:[#allocation4 + $0x64] sm:$0xf]  ;;  %v773_v9 = vld [vmem:[#allocation4 + $0x68] sm:$0xf0] }
   0xf   :  { %163 = vmatpush.bf16.msra.mxu0 %v780_v3  ;;  %v772_v10 = vor.u32 %v1054_v6, %v771_v5  ;;  %v776_v11 = vor.u32 %v1053_v8, %v773_v9  ;;  %v763_v12 = vld [vmem:[#allocation4 + $0x50] sm:$0xf]  ;;  %v1052_v13 = vld [vmem:[#allocation4 + $0x54] sm:$0xf0]  ;;  %v1051_v14 = vld [vmem:[#allocation4 + $0x54] sm:$0xf] }
  0x10   :  { %176 = vmatpush.bf16.msra.mxu1 %v784_v7  ;;  %v765_v15 = vld [vmem:[#allocation4 + $0x58] sm:$0xf0]  ;;  %v764_v16 = vor.u32 %v1052_v13, %v763_v12  ;;  %v755_v18 = vld [vmem:[#allocation4 + $0x40] sm:$0xf]  ;;  %v1050_v19 = vld [vmem:[#allocation4 + $0x44] sm:$0xf0] }
  0x11   :  { %v768_v17 = vor.u32 %v1051_v14, %v765_v15  ;;  %v1049_v20 = vld [vmem:[#allocation4 + $0x44] sm:$0xf]  ;;  %v757_v21 = vld [vmem:[#allocation4 + $0x48] sm:$0xf0]  ;;  %v756_v22 = vor.u32 %v1050_v19, %v755_v18  ;;  %v899_v23 = vld [vmem:[#allocation6 + $0xe0] sm:$0xf] }
  0x12   :  { %v1087_v24 = vld [vmem:[#allocation6 + $0xec] sm:$0xf0]  ;;  %v1027_v25 = vld [vmem:[#allocation6 + $0x1e0] sm:$0xf]  ;;  %v760_v26 = vor.u32 %v1049_v20, %v757_v21  ;;  %v1048_v28 = vld [vmem:[#allocation4 + $0x34] sm:$0xf0] }
  0x13   :  { %164 = vmatpush.bf16.msra.mxu0 %v772_v10  ;;  %v747_v27 = vld [vmem:[#allocation4 + $0x30] sm:$0xf]  ;;  %v900_v29 = vor.u32 %v1087_v24, %v899_v23  ;;  %v1047_v31 = vld [vmem:[#allocation4 + $0x34] sm:$0xf]  ;;  %v749_v32 = vld [vmem:[#allocation4 + $0x38] sm:$0xf0] }
  0x14   :  { %177 = vmatpush.bf16.msra.mxu1 %v776_v11  ;;  %v1119_v30 = vld [vmem:[#allocation6 + $0x1ec] sm:$0xf0]  ;;  %v883_v34 = vld [vmem:[#allocation6 + $0xc0] sm:$0xf]  ;;  %v748_v38 = vor.u32 %v1048_v28, %v747_v27  ;;  %v1046_v40 = vld [vmem:[#allocation4 + $0x24] sm:$0xf0]  ;;  %v752_v43 = vor.u32 %v1047_v31, %v749_v32 }
  0x15   :  { %v1028_v33 = vor.u32 %v1119_v30, %v1027_v25  ;;  %593 = vmatpush.bf16.msra.mxu2 %v900_v29  ;;  %v1083_v35 = vld [vmem:[#allocation6 + $0xcc] sm:$0xf0]  ;;  %v1011_v36 = vld [vmem:[#allocation6 + $0x1c0] sm:$0xf]  ;;  %v1045_v44 = vld [vmem:[#allocation4 + $0x24] sm:$0xf] }
  0x16   :  { %v1115_v37 = vld [vmem:[#allocation6 + $0x1cc] sm:$0xf0]  ;;  %v739_v39 = vld [vmem:[#allocation4 + $0x20] sm:$0xf]  ;;  %v884_v41 = vor.u32 %v1083_v35, %v883_v34  ;;  %v741_v47 = vld [vmem:[#allocation4 + $0x28] sm:$0xf0] }
  0x17   :  { %165 = vmatpush.bf16.msra.mxu0 %v764_v16  ;;  %606 = vmatpush.bf16.msra.mxu3 %v1028_v33  ;;  %v1012_v42 = vor.u32 %v1115_v37, %v1011_v36  ;;  %v867_v45 = vld [vmem:[#allocation6 + $0xa0] sm:$0xf]  ;;  %v1079_v46 = vld [vmem:[#allocation6 + $0xac] sm:$0xf0]  ;;  %v740_v51 = vor.u32 %v1046_v40, %v739_v39  ;;  %v744_v56 = vor.u32 %v1045_v44, %v741_v47  ;;  %v1044_v57 = vld [vmem:[#allocation4 + $0x14] sm:$0xf0] }
  0x18   :  { %178 = vmatpush.bf16.msra.mxu1 %v768_v17  ;;  %v995_v48 = vld [vmem:[#allocation6 + $0x1a0] sm:$0xf]  ;;  %v1111_v49 = vld [vmem:[#allocation6 + $0x1ac] sm:$0xf0]  ;;  %v868_v50 = vor.u32 %v1079_v46, %v867_v45  ;;  %v1043_v60 = vld [vmem:[#allocation4 + $0x14] sm:$0xf] }
  0x19   :  { %594 = vmatpush.bf16.msra.mxu2 %v884_v41  ;;  %v731_v52 = vld [vmem:[#allocation4 + $0x10] sm:$0xf]  ;;  %v996_v53 = vor.u32 %v1111_v49, %v995_v48  ;;  %v851_v54 = vld [vmem:[#allocation6 + $0x80] sm:$0xf]  ;;  %v733_v61 = vld [vmem:[#allocation4 + $0x18] sm:$0xf0] }
  0x1a   :  { %v1075_v55 = vld [vmem:[#allocation6 + $0x8c] sm:$0xf0]  ;;  %v979_v58 = vld [vmem:[#allocation6 + $0x180] sm:$0xf]  ;;  %v732_v0 = vor.u32 %v1044_v57, %v731_v52  ;;  %v1042_v1 = vld [vmem:[#allocation4 + $0x4] sm:$0xf0]  ;;  %v736_v5 = vor.u32 %v1043_v60, %v733_v61 }
  0x1b   :  { %166 = vmatpush.bf16.msra.mxu0 %v756_v22  ;;  %607 = vmatpush.bf16.msra.mxu3 %v1012_v42  ;;  %v1107_v59 = vld [vmem:[#allocation6 + $0x18c] sm:$0xf0]  ;;  %v723_v62 = vld [vmem:[#allocation4] sm:$0xf]  ;;  %v852_v63 = vor.u32 %v1075_v55, %v851_v54  ;;  %v1041_v6 = vld [vmem:[#allocation4 + $0x4] sm:$0xf] }
  0x1c   :  { %179 = vmatpush.bf16.msra.mxu1 %v760_v26  ;;  %v980_v2 = vor.u32 %v1107_v59, %v979_v58  ;;  %v835_v3 = vld [vmem:[#allocation6 + $0x60] sm:$0xf]  ;;  %v1071_v4 = vld [vmem:[#allocation6 + $0x6c] sm:$0xf0]  ;;  %v725_v9 = vld [vmem:[#allocation4 + $0x8] sm:$0xf0]  ;;  %v724_v15 = vor.u32 %v1042_v1, %v723_v62 }
  0x1d   :  { %595 = vmatpush.bf16.msra.mxu2 %v868_v50  ;;  %v963_v7 = vld [vmem:[#allocation6 + $0x160] sm:$0xf]  ;;  %v1103_v8 = vld [vmem:[#allocation6 + $0x16c] sm:$0xf0]  ;;  %v1085_v10 = vld [vmem:[#allocation6 + $0xe4] sm:$0xf]  ;;  %v836_v14 = vor.u32 %v1071_v4, %v835_v3  ;;  %v728_v19 = vor.u32 %v1041_v6, %v725_v9 }
  0x1e   :  { %v901_v11 = vld [vmem:[#allocation6 + $0xf0] sm:$0xf0]  ;;  %v1117_v12 = vld [vmem:[#allocation6 + $0x1e4] sm:$0xf]  ;;  %v964_v16 = vor.u32 %v1103_v8, %v963_v7  ;;  %v819_v17 = vld [vmem:[#allocation6 + $0x40] sm:$0xf] }
  0x1f   :  { %167 = vmatpush.bf16.msra.mxu0 %v748_v38  ;;  %608 = vmatpush.bf16.msra.mxu3 %v996_v53  ;;  %v1029_v13 = vld [vmem:[#allocation6 + $0x1f0] sm:$0xf0]  ;;  %v1067_v18 = vld [vmem:[#allocation6 + $0x4c] sm:$0xf0]  ;;  %v904_v20 = vor.u32 %v1085_v10, %v901_v11  ;;  %v947_v21 = vld [vmem:[#allocation6 + $0x140] sm:$0xf] }
  0x20   :  { %180 = vmatpush.bf16.msra.mxu1 %v752_v43  ;;  %v1099_v22 = vld [vmem:[#allocation6 + $0x14c] sm:$0xf0]  ;;  %v1032_v23 = vor.u32 %v1117_v12, %v1029_v13  ;;  %v1081_v24 = vld [vmem:[#allocation6 + $0xc4] sm:$0xf]  ;;  %v885_v25 = vld [vmem:[#allocation6 + $0xd0] sm:$0xf0]  ;;  %v820_v28 = vor.u32 %v1067_v18, %v819_v17 }
  0x21   :  { %596 = vmatpush.bf16.msra.mxu2 %v852_v63  ;;  %v1113_v26 = vld [vmem:[#allocation6 + $0x1c4] sm:$0xf]  ;;  %v1013_v27 = vld [vmem:[#allocation6 + $0x1d0] sm:$0xf0]  ;;  %v60_v29 = vld [vmem:[%s1252_s0] sm:$0xf]  ;;  %v948_v30 = vor.u32 %v1099_v22, %v947_v21  ;;  %v888_v33 = vor.u32 %v1081_v24, %v885_v25 }
  0x22   :  { %v803_v31 = vld [vmem:[#allocation6 + $0x20] sm:$0xf]  ;;  %v1063_v32 = vld [vmem:[#allocation6 + $0x2c] sm:$0xf0]  ;;  %v1016_v36 = vor.u32 %v1113_v26, %v1013_v27  ;;  %v1077_v37 = vld [vmem:[#allocation6 + $0xa4] sm:$0xf] }
  0x23   :  { %168 = vmatpush.bf16.msra.mxu0 %v740_v51  ;;  %609 = vmatpush.bf16.msra.mxu3 %v980_v2  ;;  %v931_v34 = vld [vmem:[#allocation6 + $0x120] sm:$0xf]  ;;  %v1095_v35 = vld [vmem:[#allocation6 + $0x12c] sm:$0xf0]  ;;  %v869_v38 = vld [vmem:[#allocation6 + $0xb0] sm:$0xf0]  ;;  %v804_v41 = vor.u32 %v1063_v32, %v803_v31 }
  0x24   :  { %181 = vmatpush.bf16.msra.mxu1 %v744_v56  ;;  %v1109_v39 = vld [vmem:[#allocation6 + $0x1a4] sm:$0xf]  ;;  %v997_v40 = vld [vmem:[#allocation6 + $0x1b0] sm:$0xf0]  ;;  %v932_v43 = vor.u32 %v1095_v35, %v931_v34  ;;  %v787_v44 = vld [vmem:[#allocation6] sm:$0xf]  ;;  %v872_v47 = vor.u32 %v1077_v37, %v869_v38 }
  0x25   :  { %597 = vmatpush.bf16.msra.mxu2 %v836_v14  ;;  %v1073_v42 = vld [vmem:[#allocation6 + $0x84] sm:$0xf]  ;;  %v1059_v45 = vld [vmem:[#allocation6 + $0xc] sm:$0xf0]  ;;  %v915_v46 = vld [vmem:[#allocation6 + $0x100] sm:$0xf]  ;;  %v1000_v51 = vor.u32 %v1109_v39, %v997_v40 }
  0x26   :  { %v1091_v48 = vld [vmem:[#allocation6 + $0x10c] sm:$0xf0]  ;;  %v907_v49 = vld [vmem:[#allocation6 + $0xe8] sm:$0xf]  ;;  %v1088_v50 = vld [vmem:[#allocation6 + $0xf4] sm:$0xf0]  ;;  %v788_v57 = vor.u32 %v1059_v45, %v787_v44 }
  0x27   :  { %169 = vmatpush.bf16.msra.mxu0 %v732_v0  ;;  %610 = vmatpush.bf16.msra.mxu3 %v964_v16  ;;  %v853_v52 = vld [vmem:[#allocation6 + $0x90] sm:$0xf0]  ;;  %v1035_v53 = vld [vmem:[#allocation6 + $0x1e8] sm:$0xf]  ;;  %v1120_v54 = vld [vmem:[#allocation6 + $0x1f4] sm:$0xf0]  ;;  %v916_v58 = vor.u32 %v1091_v48, %v915_v46  ;;  %v908_v59 = vor.u32 %v1088_v50, %v907_v49 }
  0x28   :  { %182 = vmatpush.bf16.msra.mxu1 %v736_v5  ;;  %v1105_v55 = vld [vmem:[#allocation6 + $0x184] sm:$0xf]  ;;  %v981_v56 = vld [vmem:[#allocation6 + $0x190] sm:$0xf0]  ;;  %v856_v60 = vor.u32 %v1073_v42, %v853_v52  ;;  %v1036_v62 = vor.u32 %v1120_v54, %v1035_v53  ;;  %v891_v63 = vld [vmem:[#allocation6 + $0xc8] sm:$0xf] }
  0x29   :  { %598 = vmatpush.bf16.msra.mxu2 %v820_v28  ;;  %v1069_v61 = vld [vmem:[#allocation6 + $0x64] sm:$0xf]  ;;  %v1084_v0 = vld [vmem:[#allocation6 + $0xd4] sm:$0xf0]  ;;  %v984_v1 = vor.u32 %v1105_v55, %v981_v56  ;;  %v837_v2 = vld [vmem:[#allocation6 + $0x70] sm:$0xf0] }
  0x2a   :  { %v1019_v3 = vld [vmem:[#allocation6 + $0x1c8] sm:$0xf]  ;;  %v1116_v4 = vld [vmem:[#allocation6 + $0x1d4] sm:$0xf0]  ;;  %v1101_v5 = vld [vmem:[#allocation6 + $0x164] sm:$0xf]  ;;  %v892_v7 = vor.u32 %v1084_v0, %v891_v63  ;;  %v840_v8 = vor.u32 %v1069_v61, %v837_v2 }
  0x2b   :  { %170 = vmatpush.bf16.msra.mxu0 %v724_v15  ;;  %611 = vmatpush.bf16.msra.mxu3 %v948_v30  ;;  %v965_v6 = vld [vmem:[#allocation6 + $0x170] sm:$0xf0]  ;;  %v1020_v9 = vor.u32 %v1116_v4, %v1019_v3  ;;  %v1065_v11 = vld [vmem:[#allocation6 + $0x44] sm:$0xf]  ;;  %v1086_v27 = vld [vmem:[#allocation6 + $0xec] sm:$0xf] }
  0x2c   :  { %183 = vmatpush.bf16.msra.mxu1 %v728_v19  ;;  %v968_v10 = vor.u32 %v1101_v5, %v965_v6  ;;  %v821_v12 = vld [vmem:[#allocation6 + $0x50] sm:$0xf0]  ;;  %v1097_v13 = vld [vmem:[#allocation6 + $0x144] sm:$0xf]  ;;  %v909_v28 = vld [vmem:[#allocation6 + $0xf8] sm:$0xf0] }
  0x2d   :  { %599 = vmatpush.bf16.msra.mxu2 %v804_v41  ;;  %v949_v14 = vld [vmem:[#allocation6 + $0x150] sm:$0xf0]  ;;  %v824_v15 = vor.u32 %v1065_v11, %v821_v12  ;;  %v1061_v17 = vld [vmem:[#allocation6 + $0x24] sm:$0xf]  ;;  %v1037_v30 = vld [vmem:[#allocation6 + $0x1f8] sm:$0xf0] }
  0x2e   :  { %171 = vmatmul.bf16.vlgmr.msra.gmra.mxu0 %v60_v29  ;;  %v952_v16 = vor.u32 %v1097_v13, %v949_v14  ;;  %v805_v18 = vld [vmem:[#allocation6 + $0x30] sm:$0xf0]  ;;  %v1093_v19 = vld [vmem:[#allocation6 + $0x124] sm:$0xf]  ;;  %v1082_v35 = vld [vmem:[#allocation6 + $0xcc] sm:$0xf] }
  0x2f   :  { %619 = vmatpush.bf16.msrb.mxu0 %v904_v20  ;;  %184 = vmatmul.bf16.vlgmr.msra.gmra.mxu1 %v60_v29  ;;  %v933_v20 = vld [vmem:[#allocation6 + $0x130] sm:$0xf0]  ;;  %v808_v21 = vor.u32 %v1061_v17, %v805_v18  ;;  %v1089_v25 = vld [vmem:[#allocation6 + $0x104] sm:$0xf]  ;;  %v1118_v29 = vld [vmem:[#allocation6 + $0x1ec] sm:$0xf] }
  0x30   :  { %632 = vmatpush.bf16.msrb.mxu1 %v1032_v23  ;;  %612 = vmatpush.bf16.msra.mxu3 %v932_v43  ;;  %v936_v22 = vor.u32 %v1093_v19, %v933_v20  ;;  %v1057_v23 = vld [vmem:[#allocation6 + $0x4] sm:$0xf]  ;;  %v789_v24 = vld [vmem:[#allocation6 + $0x10] sm:$0xf0]  ;;  %v1040_v34 = vor.u32 %v1118_v29, %v1037_v30  ;;  %v1114_v37 = vld [vmem:[#allocation6 + $0x1cc] sm:$0xf] }
  0x31   :  { %600 = vmatpush.bf16.msra.mxu2 %v788_v57  ;;  %v917_v26 = vld [vmem:[#allocation6 + $0x110] sm:$0xf0]  ;;  %v792_v31 = vor.u32 %v1057_v23, %v789_v24  ;;  %v1021_v38 = vld [vmem:[#allocation6 + $0x1d8] sm:$0xf0]  ;;  %v875_v41 = vld [vmem:[#allocation6 + $0xa8] sm:$0xf] }
  0x32   :  { %v920_v32 = vor.u32 %v1089_v25, %v917_v26  ;;  %v1024_v40 = vor.u32 %v1114_v37, %v1021_v38  ;;  %v1080_v42 = vld [vmem:[#allocation6 + $0xb4] sm:$0xf0]  ;;  %v1003_v43 = vld [vmem:[#allocation6 + $0x1a8] sm:$0xf]  ;;  %v1078_v46 = vld [vmem:[#allocation6 + $0xac] sm:$0xf] }
  0x33   :  { %620 = vmatpush.bf16.msrb.mxu0 %v888_v33  ;;  %v912_v33 = vor.u32 %v1086_v27, %v909_v28  ;;  %v876_v44 = vor.u32 %v1080_v42, %v875_v41  ;;  %v1112_v45 = vld [vmem:[#allocation6 + $0x1b4] sm:$0xf0]  ;;  %v877_v48 = vld [vmem:[#allocation6 + $0xb8] sm:$0xf0]  ;;  %v1110_v49 = vld [vmem:[#allocation6 + $0x1ac] sm:$0xf] }
  0x34   :  { %633 = vmatpush.bf16.msrb.mxu1 %v1016_v36  ;;  %613 = vmatpush.bf16.msra.mxu3 %v916_v58  ;;  %v893_v36 = vld [vmem:[#allocation6 + $0xd8] sm:$0xf0]  ;;  %v859_v53 = vld [vmem:[#allocation6 + $0x88] sm:$0xf]  ;;  %v1076_v54 = vld [vmem:[#allocation6 + $0x94] sm:$0xf0] }
  0x35   :  { %645 = vmatpush.bf16.msrb.mxu2 %v908_v59  ;;  %v896_v39 = vor.u32 %v1082_v35, %v893_v36  ;;  %v1005_v50 = vld [vmem:[#allocation6 + $0x1b8] sm:$0xf0]  ;;  %v987_v55 = vld [vmem:[#allocation6 + $0x188] sm:$0xf]  ;;  %v860_v56 = vor.u32 %v1076_v54, %v859_v53  ;;  %v1108_v57 = vld [vmem:[#allocation6 + $0x194] sm:$0xf0]  ;;  %v192_v53 = vstv %s1255_s3 }
  0x36   :  { %v1008_v52 = vor.u32 %v1110_v49, %v1005_v50  ;;  %v1074_v58 = vld [vmem:[#allocation6 + $0x8c] sm:$0xf]  ;;  %v861_v59 = vld [vmem:[#allocation6 + $0x98] sm:$0xf0]  ;;  %v1072_v2 = vld [vmem:[#allocation6 + $0x74] sm:$0xf0] }
  0x37   :  { %621 = vmatpush.bf16.msrb.mxu0 %v872_v47  ;;  %v1004_v47 = vor.u32 %v1112_v45, %v1003_v43  ;;  %v864_v61 = vor.u32 %v1074_v58, %v861_v59  ;;  %v989_v63 = vld [vmem:[#allocation6 + $0x198] sm:$0xf0]  ;;  %v971_v3 = vld [vmem:[#allocation6 + $0x168] sm:$0xf]  ;;  %v1104_v5 = vld [vmem:[#allocation6 + $0x174] sm:$0xf0] }
  0x38   :  { %634 = vmatpush.bf16.msrb.mxu1 %v1000_v51  ;;  %658 = vmatpush.bf16.msrb.mxu3 %v1036_v62  ;;  %v880_v51 = vor.u32 %v1078_v46, %v877_v48  ;;  %v1106_v62 = vld [vmem:[#allocation6 + $0x18c] sm:$0xf]  ;;  %v973_v11 = vld [vmem:[#allocation6 + $0x178] sm:$0xf0]  ;;  %v827_v12 = vld [vmem:[#allocation6 + $0x48] sm:$0xf] }
  0x39   :  { %646 = vmatpush.bf16.msrb.mxu2 %v892_v7  ;;  %v992_v0 = vor.u32 %v1106_v62, %v989_v63  ;;  %v1070_v6 = vld [vmem:[#allocation6 + $0x6c] sm:$0xf]  ;;  %v845_v7 = vld [vmem:[#allocation6 + $0x78] sm:$0xf0]  ;;  %v1068_v14 = vld [vmem:[#allocation6 + $0x54] sm:$0xf0] }
  0x3a   :  { %v828_v17 = vor.u32 %v1068_v14, %v827_v12  ;;  %v1066_v19 = vld [vmem:[#allocation6 + $0x4c] sm:$0xf]  ;;  %v829_v20 = vld [vmem:[#allocation6 + $0x58] sm:$0xf0]  ;;  %v811_v24 = vld [vmem:[#allocation6 + $0x28] sm:$0xf] }
  0x3b   :  { %622 = vmatpush.bf16.msrb.mxu0 %v856_v60  ;;  %v988_v60 = vor.u32 %v1108_v57, %v987_v55  ;;  %v957_v23 = vld [vmem:[#allocation6 + $0x158] sm:$0xf0]  ;;  %v1064_v25 = vld [vmem:[#allocation6 + $0x34] sm:$0xf0]  ;;  %v939_v27 = vld [vmem:[#allocation6 + $0x128] sm:$0xf] }
  0x3c   :  { %635 = vmatpush.bf16.msrb.mxu1 %v984_v1  ;;  %659 = vmatpush.bf16.msrb.mxu3 %v1020_v9  ;;  %v843_v1 = vld [vmem:[#allocation6 + $0x68] sm:$0xf]  ;;  %v848_v9 = vor.u32 %v1070_v6, %v845_v7  ;;  %v1096_v28 = vld [vmem:[#allocation6 + $0x134] sm:$0xf0]  ;;  %v1062_v29 = vld [vmem:[#allocation6 + $0x2c] sm:$0xf]  ;;  %v812_v30 = vor.u32 %v1064_v25, %v811_v24 }
  0x3d   :  { %647 = vmatpush.bf16.msrb.mxu2 %v876_v44  ;;  %v844_v4 = vor.u32 %v1072_v2, %v843_v1  ;;  %v795_v35 = vld [vmem:[#allocation6 + $0x8] sm:$0xf]  ;;  %v1060_v36 = vld [vmem:[#allocation6 + $0x14] sm:$0xf0]  ;;  %v1058_v41 = vld [vmem:[#allocation6 + $0xc] sm:$0xf] }
  0x3e   :  { %v797_v42 = vld [vmem:[#allocation6 + $0x18] sm:$0xf0]  ;;  %v1090_v43 = vld [vmem:[#allocation6 + $0x10c] sm:$0xf]  ;;  %v796_v45 = vor.u32 %v1060_v36, %v795_v35  ;;  %v77_v49 = vld [vmem:[%s1254_s2] sm:$0x3] }
  0x3f   :  { %623 = vmatpush.bf16.msrb.mxu0 %v840_v8  ;;  %v972_v8 = vor.u32 %v1104_v5, %v971_v3  ;;  %v925_v44 = vld [vmem:[#allocation6 + $0x118] sm:$0xf0]  ;;  %v79_v50 = vperm.slane %v77_v49, 0  ;;  %v263_v1 = vld [vmem:[%s1257_s5] sm:$0xf] }
  0x40   :  { %636 = vmatpush.bf16.msrb.mxu1 %v968_v10  ;;  %660 = vmatpush.bf16.msrb.mxu3 %v1004_v47  ;;  %v1102_v10 = vld [vmem:[#allocation6 + $0x16c] sm:$0xf]  ;;  %v800_v47 = vor.u32 %v1058_v41, %v797_v42  ;;  %v928_v48 = vor.u32 %v1090_v43, %v925_v44  ;;  %v266_v2 = vperm.slane %v263_v1, 1  ;;  %v265_v6 = vperm.slane %v263_v1, 0 }
  0x41   :  { %648 = vmatpush.bf16.msrb.mxu2 %v860_v56  ;;  %v976_v13 = vor.u32 %v1102_v10, %v973_v11 }
  0x43   :  { %624 = vmatpush.bf16.msrb.mxu0 %v824_v15  ;;  %v955_v15 = vld [vmem:[#allocation6 + $0x148] sm:$0xf] }
  0x44   :  { %637 = vmatpush.bf16.msrb.mxu1 %v952_v16  ;;  %661 = vmatpush.bf16.msrb.mxu3 %v988_v60  ;;  %v1100_v16 = vld [vmem:[#allocation6 + $0x154] sm:$0xf0] }
  0x45   :  { %649 = vmatpush.bf16.msrb.mxu2 %v844_v4  ;;  %v956_v18 = vor.u32 %v1100_v16, %v955_v15 }
  0x47   :  { %625 = vmatpush.bf16.msrb.mxu0 %v808_v21  ;;  %v1098_v21 = vld [vmem:[#allocation6 + $0x14c] sm:$0xf] }
  0x48   :  { %638 = vmatpush.bf16.msrb.mxu1 %v936_v22  ;;  %662 = vmatpush.bf16.msrb.mxu3 %v972_v8  ;;  %v832_v22 = vor.u32 %v1066_v19, %v829_v20  ;;  %v960_v26 = vor.u32 %v1098_v21, %v957_v23  ;;  %v702_v8 = vstv %s1258_s6  ;;  %v268_v19 = vperm.slane %v263_v1, 3 }
  0x49   :  { %650 = vmatpush.bf16.msrb.mxu2 %v828_v17 }
  0x4b   :  { %626 = vmatpush.bf16.msrb.mxu0 %v792_v31  ;;  %v813_v31 = vld [vmem:[#allocation6 + $0x38] sm:$0xf0] }
  0x4c   :  { %639 = vmatpush.bf16.msrb.mxu1 %v920_v32  ;;  %v1094_v32 = vld [vmem:[#allocation6 + $0x12c] sm:$0xf]  ;;  %663 = vmatpush.bf16.msrb.mxu3 %v956_v18  ;;  %v816_v37 = vor.u32 %v1062_v29, %v813_v31 }
  0x4d   :  { %651 = vmatpush.bf16.msrb.mxu2 %v812_v30 }
  0x4f   :  { %671 = vmatpush.bf16.msra.mxu0 %v912_v33  ;;  %v941_v33 = vld [vmem:[#allocation6 + $0x138] sm:$0xf0] }
  0x50   :  { %684 = vmatpush.bf16.msra.mxu1 %v1040_v34  ;;  %v940_v34 = vor.u32 %v1096_v28, %v939_v27  ;;  %v944_v38 = vor.u32 %v1094_v32, %v941_v33 }
  0x51   :  { %652 = vmatpush.bf16.msrb.mxu2 %v796_v45 }
  0x52   :  { %664 = vmatpush.bf16.msrb.mxu3 %v940_v34 }
  0x53   :  { %672 = vmatpush.bf16.msra.mxu0 %v896_v39  ;;  %v923_v39 = vld [vmem:[#allocation6 + $0x108] sm:$0xf] }
  0x54   :  { %685 = vmatpush.bf16.msra.mxu1 %v1024_v40  ;;  %v1092_v40 = vld [vmem:[#allocation6 + $0x114] sm:$0xf0] }
  0x55   :  { %v924_v46 = vor.u32 %v1092_v40, %v923_v39 }
  0x57   :  { %673 = vmatpush.bf16.msra.mxu0 %v880_v51  ;;  %665 = vmatpush.bf16.msrb.mxu3 %v924_v46  ;;  %v80_v51 = vperm.slane %v77_v49, 1 }
  0x58   :  { %686 = vmatpush.bf16.msra.mxu1 %v1008_v52 }
  0x5b   :  { %674 = vmatpush.bf16.msra.mxu0 %v864_v61 }
  0x5c   :  { %687 = vmatpush.bf16.msra.mxu1 %v992_v0 }
  0x5f   :  { %675 = vmatpush.bf16.msra.mxu0 %v848_v9 }
  0x60   :  { %688 = vmatpush.bf16.msra.mxu1 %v976_v13 }
  0x63   :  { %676 = vmatpush.bf16.msra.mxu0 %v832_v22 }
  0x64   :  { %689 = vmatpush.bf16.msra.mxu1 %v960_v26  ;;  %v267_v26 = vperm.slane %v263_v1, 2 }
  0x67   :  { %677 = vmatpush.bf16.msra.mxu0 %v816_v37 }
  0x68   :  { %690 = vmatpush.bf16.msra.mxu1 %v944_v38 }
  0x6b   :  { %678 = vmatpush.bf16.msra.mxu0 %v800_v47 }
  0x6c   :  { %691 = vmatpush.bf16.msra.mxu1 %v928_v48 }
  0xab   :  { %v172_v52 = vpop.f32.mrf.mxu0 }
  0xac   :  { %v173_v54 = vadd.f32 %v172_v52, %v79_v50  ;;  %v185_v55 = vpop.f32.mrf.mxu1 }
  0xad   :  { %v186_v56 = vadd.f32 %v185_v55, %v80_v51 }
  0xae   :  { %vm190_vm0 = vcmp.gt.f32.partialorder %v173_v54, 0.0  ;;  %v193_v57 = vmul.f32 %v192_v53, %v173_v54 }
  0xaf   :  { %vm191_vm1 = vcmp.gt.f32.partialorder %v186_v56, 0.0  ;;  %v194_v58 = vmul.f32 %v192_v53, %v186_v56 }
  0xb0   :  { %v195_v59 = vsel %vm190_vm0, %v173_v54, %v193_v57 }
  0xb1   :  { %v197_v60 = vpack.c.bf16 %v195_v59, %v195_v59  ;;  %v196_v61 = vsel %vm191_vm1, %v186_v56, %v194_v58 }
  0xb2   :  { %v198_v62 = vpack.c.bf16 %v196_v61, %v196_v61 }
  0xb3   :  { %v174_v63 = vpop.f32.mrf.mxu0  ;;  %601 = vmatmul.bf16.vlgmr.msra.gmra.mxu2 %v197_v60  ;;  %627 = vmatmul.bf16.vlgmr.msrb.gmra.mxu0 %v197_v60 }
  0xb4   :  { %v187_v0 = vpop.f32.mrf.mxu1  ;;  %614 = vmatmul.bf16.vlgmr.msra.gmra.mxu3 %v198_v62  ;;  %640 = vmatmul.bf16.vlgmr.msrb.gmra.mxu1 %v198_v62 }
  0xc3   :  { %653 = vmatmul.bf16.vlgmr.msrb.gmra.mxu2 %v197_v60  ;;  %679 = vmatmul.bf16.vlgmr.msra.gmra.mxu0 %v197_v60 }
  0xc4   :  { %666 = vmatmul.bf16.vlgmr.msrb.gmra.mxu3 %v198_v62  ;;  %692 = vmatmul.bf16.vlgmr.msra.gmra.mxu1 %v198_v62 }
 0x130   :  { %v628_v3 = vpop.f32.mrf.mxu0 }
 0x131   :  { %v629_v4 = vadd.f32 %v628_v3, %v266_v2  ;;  %v641_v5 = vpop.f32.mrf.mxu1 }
 0x133   :  { %v642_v7 = vadd.f32 %v641_v5, %v629_v4 }
 0x135   :  { %v704_v13 = vmul.f32 %v702_v8, %v642_v7  ;;  %vm699_vm2 = vcmp.gt.f32.partialorder %v642_v7, 0.0 }
 0x136   :  { %v602_v9 = vpop.f32.mrf.mxu2 }
 0x137   :  { %v603_v10 = vadd.f32 %v602_v9, %v265_v6  ;;  %v615_v11 = vpop.f32.mrf.mxu3  ;;  %v708_v17 = vsel %vm699_vm2, %v642_v7, %v704_v13 }
 0x138   :  { %v630_v12 = vpop.f32.mrf.mxu0 }
 0x139   :  { %v616_v14 = vadd.f32 %v615_v11, %v603_v10  ;;  %v643_v15 = vpop.f32.mrf.mxu1 }
 0x13b   :  { %vm698_vm3 = vcmp.gt.f32.partialorder %v616_v14, 0.0  ;;  %v703_v16 = vmul.f32 %v702_v8, %v616_v14 }
 0x13d   :  { %v707_v18 = vsel %vm698_vm3, %v616_v14, %v703_v16 }
 0x13e   :  { %v711_v20 = vpack.c.bf16 %v708_v17, %v707_v18  ;;  %v604_v21 = vpop.f32.mrf.mxu2 }
 0x13f   :  { %v617_v22 = vpop.f32.mrf.mxu3 }
 0x140   :  { %713 = vst [vmem:[%s1259_s7] sm:$0xff] %v711_v20  ;;  %v680_v23 = vpop.f32.mrf.mxu0 }
 0x141   :  { %v681_v24 = vadd.f32 %v680_v23, %v268_v19  ;;  %v693_v25 = vpop.f32.mrf.mxu1 }
 0x143   :  { %v694_v27 = vadd.f32 %v693_v25, %v681_v24 }
 0x145   :  { %v706_v32 = vmul.f32 %v702_v8, %v694_v27  ;;  %vm701_vm4 = vcmp.gt.f32.partialorder %v694_v27, 0.0 }
 0x146   :  { %v654_v28 = vpop.f32.mrf.mxu2 }
 0x147   :  { %v655_v29 = vadd.f32 %v654_v28, %v267_v26  ;;  %v667_v30 = vpop.f32.mrf.mxu3  ;;  %v710_v36 = vsel %vm701_vm4, %v694_v27, %v706_v32 }
 0x148   :  { %v682_v31 = vpop.f32.mrf.mxu0 }
 0x149   :  { %v668_v33 = vadd.f32 %v667_v30, %v655_v29  ;;  %v695_v34 = vpop.f32.mrf.mxu1 }
 0x14b   :  { %vm700_vm5 = vcmp.gt.f32.partialorder %v668_v33, 0.0  ;;  %v705_v35 = vmul.f32 %v702_v8, %v668_v33 }
 0x14d   :  { %v709_v37 = vsel %vm700_vm5, %v668_v33, %v705_v35 }
 0x14e   :  { %v712_v38 = vpack.c.bf16 %v710_v36, %v709_v37  ;;  %v656_v39 = vpop.f32.mrf.mxu2 }
 0x14f   :  { %v669_v40 = vpop.f32.mrf.mxu3 }
 0x150   :  { %714 = vst [vmem:[%s1259_s7 + $0x8] sm:$0xff] %v712_v38 }
 0x151   :  { %719 = vsyncpa [#allocation5], 1 }
 0x152   :  { %720 = vsyncpa [#allocation7], 1 }

// kernel: decoder_point_cloud_forward.3
= control target key start
LH: loop header
LB: loop body
LE: loop exit
PB: predicated region body
PF: predicated region fallthrough
CT: control target
= control target key end

     0   :  { %8 = vsyncpa [#allocation3], 0  ;;  %s1514_s0 = inlined_call_operand.vmem [shape: bf16[8,512], index: 0, kind: input, shape index: {}]   ;;  %s1515_s1 = inlined_call_operand.hbm [shape: bf16[3,512,256], index: 1, kind: input, shape index: {}]   ;;  %s1516_s2 = inlined_call_operand.vmem [shape: f32[3,1,256], index: 2, kind: input, shape index: {}]   ;;  %s1517_s3 = inlined_call_operand.vmem [shape: f32[8,768], index: 3, kind: output, shape index: {}]  }
   0x1   :  { %10 = vsyncpa [#allocation3 + $0x1], 0  ;;  %s1266_s12 = smov 0   ;;  %s1268_s13 = smov 0  }
   0x2   :  { %s1270_s14 = smov 0   ;;  %s1272_s15 = smov 0  }
   0x3 LB: > { %s1285_s16 = sadd.s32 4294967295, %s1242_s15   ;;  %s1288_s17 = sadd.s32 1, %s1242_s15   ;;  %s1242_s15 = sphi %s1272_s15, %s1524_s15   ;;  %s1238_s14 = sphi %s1270_s14, %s1523_s14   ;;  %s1234_s13 = sphi %s1268_s13, %s1522_s13   ;;  %s1230_s12 = sphi %s1266_s12, %s1521_s12  }
   0x4   : > { %s41_s18 = ssub.s32 %s1242_s15, %s1288_s17  ;;  %s44_s19 = sadd.s32 1, %s1238_s14 }
   0x5   : > { %p42_p0 = scmp.eq.s32.totalorder %s41_s18, 0  ;;  %p51_p1 = scmp.ne.s32.totalorder %s1238_s14, %s1234_s13 }
   0x6   : > { %p52_p2 = scmp.eq.s32.totalorder %s1242_s15, 0  ;;  %p57_p3 = scmp.ne.s32.totalorder %s1234_s13, %s1230_s12 }
   0x7   : > { %s1298_s20 = scalar_select %p42_p0, %s1238_s14, %s44_s19  }
   0x8   : > { %p1300_p4 = por %p52_p2, %p51_p1  ;;  %p58_p5 = scmp.eq.s32.totalorder %s1285_s16, 0 }
   0x9   : > { %p1143_p6 = scmp.lt.s32.totalorder %s1242_s15, 3  ;;  %s136_s23 = sand.u32 1, %s1238_s14  }
   0xa   : > { %p1306_p7 = por %p58_p5, %p57_p3  ;;  %s806_s24 = sshll.u32 %s136_s23, 9 }
   0xb   : > { %s1072_s25 = sshll.u32 %s1242_s15, 9  ;;  %s140_s29 = scalar_lea.vmem [#allocation2], %s806_s24 }
   0xc   : > { %s145_s28 = scalar_lea.hbm %s1515_s1, %s1072_s25  ;;  %s148_s30 = sshll.u32 %s140_s29, 4  ;;  %s149_s30 = int_to_ptr.vmem [resolvable:$true] %s148_s30 }
   0xd   : > { %s146_s4 = sshll.u32 %s145_s28, 4  ;;  %p1317_p8 = pnand %p1143_p6, %p1300_p4  ;;  %s147_s4 = int_to_ptr.hbm [resolvable:$true] %s146_s4 }
   0xe   : > { %p809_p9 = scmp.ge.s32.totalorder %s1242_s15, 1  ;;  %s137_s6 = scalar_lea.sflag [#allocation3], %s136_s23 }
   0xf   : > { %s1178_s7 = sshra.s32 %s147_s4, 4  ;;  %p1182_p11 = pneg %p1317_p8  ;;  %s1179_s7 = int_to_ptr.hbm [resolvable:$true] %s1178_s7 }
  0x10   : > { %s1180_s8 = scalar_lea.hbm %s1179_s7, 512  ;;  %s1185_s11 = scalar_lea.hbm %s1515_s1, 1536 }
  0x11   : > { %p1181_p10 = scmp.ne.s32.totalorder %s1179_s7, %s1180_s8  ;;  %p1186_p0 = scmp.lt.s32.totalorder %s1179_s7, %s1515_s1 }
  0x12   : > { %p1187_p1 = scmp.lt.s32.totalorder %s1185_s11, %s1180_s8 }
  0x13   : > { %p1183_p12 = pnand %p1182_p11, %p1181_p10 }
  0x14   : > { %p1188_p2 = por %p1187_p1, %p1186_p0 }
  0x15   : > { %p1184_p13 = pneg %p1183_p12 }
  0x17   : > { %p1189_p3 = pnand %p1188_p2, %p1184_p13 }
  0x19   : > { %1192 = shalt.err (!%p1189_p3)
}
  0x1a   : > { %s1244_s19 = smov 128   ;;  %s1245_s21 = smov 8  }
  0x1b   : > { %1142 = dma.hbm_to_vmem [thread:$0]  (!%p1317_p8), %s147_s4, 8192, %s149_s30, %s137_s6, %s1244_s19, %s1244_s19, %s1245_s21  }
  0x1c   : > { %p163_p4 = scmp.lt.s32.totalorder %s1242_s15, 4 }
  0x1e   : > { %p164_p5 = pnand %p809_p9, %p163_p4 }
  0x1f   : > { %s169_s23 = sand.u32 (!%p164_p5), 1, %s1234_s13  }
  0x20   : > { %167 = sbr.rel (%p164_p5) target bundleno = 247 (0xf7), region = 32  ;;  %s810_s24 = sshll.u32 (!%p164_p5), %s169_s23, 9 }
  0x21   : > { %s170_s25 = scalar_lea.sflag (!%p164_p5), [#allocation3], %s169_s23  ;;  %s1336_s26 = scalar_lea.vmem (!%p164_p5), [#allocation2], %s810_s24 }
  0x25   : > { %1225 = dma.done.wait (%p1306_p7), %s170_s25, 8192  }
  0x26   : > { %1227 = vsyncadd (%p1306_p7), %s170_s25, 4294959104  ;;  %v872_v0 = vld [vmem:[%s1336_s26 + $0x70] sm:$0xf]  ;;  %v1088_v1 = vld [vmem:[%s1336_s26 + $0x74] sm:$0xf0]  ;;  %p201_p6 = scmp.lt.s32.totalorder %s1285_s16, 2 }
  0x27   : > { %v936_v2 = vld [vmem:[%s1336_s26 + $0xf0] sm:$0xf]  ;;  %v873_v3 = vor.u32 %v1088_v1, %v872_v0  ;;  %v1104_v4 = vld [vmem:[%s1336_s26 + $0xf4] sm:$0xf0]  ;;  %v864_v11 = vld [vmem:[%s1336_s26 + $0x60] sm:$0xf] }
  0x28   : > { %v1000_v5 = vld [vmem:[%s1336_s26 + $0x170] sm:$0xf]  ;;  %v1120_v6 = vld [vmem:[%s1336_s26 + $0x174] sm:$0xf0]  ;;  %v937_v7 = vor.u32 %v1104_v4, %v936_v2  ;;  %v1086_v13 = vld [vmem:[%s1336_s26 + $0x64] sm:$0xf0] }
  0x29   : > { %v1001_v8 = vor.u32 %v1120_v6, %v1000_v5  ;;  %v1064_v9 = vld [vmem:[%s1336_s26 + $0x1f0] sm:$0xf]  ;;  %v1136_v10 = vld [vmem:[%s1336_s26 + $0x1f4] sm:$0xf0]  ;;  %617 = vmatpush.bf16.msra.mxu0 %v873_v3  ;;  %v928_v14 = vld [vmem:[%s1336_s26 + $0xe0] sm:$0xf]  ;;  %v865_v16 = vor.u32 %v1086_v13, %v864_v11 }
  0x2a   : > { %v1065_v12 = vor.u32 %v1136_v10, %v1064_v9  ;;  %v1102_v15 = vld [vmem:[%s1336_s26 + $0xe4] sm:$0xf0]  ;;  %630 = vmatpush.bf16.msra.mxu1 %v937_v7  ;;  %v992_v18 = vld [vmem:[%s1336_s26 + $0x160] sm:$0xf]  ;;  %v856_v23 = vld [vmem:[%s1336_s26 + $0x50] sm:$0xf] }
  0x2b   : > { %643 = vmatpush.bf16.msra.mxu2 %v1001_v8  ;;  %v929_v17 = vor.u32 %v1102_v15, %v928_v14  ;;  %v1118_v19 = vld [vmem:[%s1336_s26 + $0x164] sm:$0xf0]  ;;  %v1056_v20 = vld [vmem:[%s1336_s26 + $0x1e0] sm:$0xf]  ;;  %v1084_v24 = vld [vmem:[%s1336_s26 + $0x54] sm:$0xf0] }
  0x2c   : > { %656 = vmatpush.bf16.msra.mxu3 %v1065_v12  ;;  %v993_v21 = vor.u32 %v1118_v19, %v992_v18  ;;  %v1134_v22 = vld [vmem:[%s1336_s26 + $0x1e4] sm:$0xf0]  ;;  %v920_v26 = vld [vmem:[%s1336_s26 + $0xd0] sm:$0xf]  ;;  %v1100_v27 = vld [vmem:[%s1336_s26 + $0xd4] sm:$0xf0]  ;;  %v857_v29 = vor.u32 %v1084_v24, %v856_v23 }
  0x2d   : > { %v1057_v25 = vor.u32 %v1134_v22, %v1056_v20  ;;  %v984_v28 = vld [vmem:[%s1336_s26 + $0x150] sm:$0xf]  ;;  %618 = vmatpush.bf16.msra.mxu0 %v865_v16  ;;  %v1116_v30 = vld [vmem:[%s1336_s26 + $0x154] sm:$0xf0]  ;;  %v921_v33 = vor.u32 %v1100_v27, %v920_v26  ;;  %v848_v35 = vld [vmem:[%s1336_s26 + $0x40] sm:$0xf] }
  0x2e   : > { %v1048_v31 = vld [vmem:[%s1336_s26 + $0x1d0] sm:$0xf]  ;;  %v1132_v32 = vld [vmem:[%s1336_s26 + $0x1d4] sm:$0xf0]  ;;  %631 = vmatpush.bf16.msra.mxu1 %v929_v17  ;;  %v985_v34 = vor.u32 %v1116_v30, %v984_v28  ;;  %v1082_v36 = vld [vmem:[%s1336_s26 + $0x44] sm:$0xf0] }
  0x2f   : > { %644 = vmatpush.bf16.msra.mxu2 %v993_v21  ;;  %v912_v37 = vld [vmem:[%s1336_s26 + $0xc0] sm:$0xf]  ;;  %v1049_v38 = vor.u32 %v1132_v32, %v1048_v31  ;;  %v1098_v39 = vld [vmem:[%s1336_s26 + $0xc4] sm:$0xf0]  ;;  %v849_v44 = vor.u32 %v1082_v36, %v848_v35  ;;  %v840_v47 = vld [vmem:[%s1336_s26 + $0x30] sm:$0xf] }
  0x30   : > { %657 = vmatpush.bf16.msra.mxu3 %v1057_v25  ;;  %v976_v40 = vld [vmem:[%s1336_s26 + $0x140] sm:$0xf]  ;;  %v1114_v41 = vld [vmem:[%s1336_s26 + $0x144] sm:$0xf0]  ;;  %v913_v45 = vor.u32 %v1098_v39, %v912_v37  ;;  %v1080_v48 = vld [vmem:[%s1336_s26 + $0x34] sm:$0xf0] }
  0x31   : > { %v1040_v42 = vld [vmem:[%s1336_s26 + $0x1c0] sm:$0xf]  ;;  %v1130_v43 = vld [vmem:[%s1336_s26 + $0x1c4] sm:$0xf0]  ;;  %619 = vmatpush.bf16.msra.mxu0 %v857_v29  ;;  %v977_v46 = vor.u32 %v1114_v41, %v976_v40  ;;  %v904_v49 = vld [vmem:[%s1336_s26 + $0xb0] sm:$0xf]  ;;  %v841_v56 = vor.u32 %v1080_v48, %v840_v47 }
  0x32   : > { %632 = vmatpush.bf16.msra.mxu1 %v921_v33  ;;  %v1041_v50 = vor.u32 %v1130_v43, %v1040_v42  ;;  %v1096_v51 = vld [vmem:[%s1336_s26 + $0xb4] sm:$0xf0]  ;;  %v968_v52 = vld [vmem:[%s1336_s26 + $0x130] sm:$0xf]  ;;  %v832_v59 = vld [vmem:[%s1336_s26 + $0x20] sm:$0xf] }
  0x33   : > { %645 = vmatpush.bf16.msra.mxu2 %v985_v34  ;;  %v1112_v53 = vld [vmem:[%s1336_s26 + $0x134] sm:$0xf0]  ;;  %v1032_v54 = vld [vmem:[%s1336_s26 + $0x1b0] sm:$0xf]  ;;  %v905_v57 = vor.u32 %v1096_v51, %v904_v49  ;;  %v1078_v60 = vld [vmem:[%s1336_s26 + $0x24] sm:$0xf0] }
  0x34   : > { %658 = vmatpush.bf16.msra.mxu3 %v1049_v38  ;;  %v1128_v55 = vld [vmem:[%s1336_s26 + $0x1b4] sm:$0xf0]  ;;  %v969_v58 = vor.u32 %v1112_v53, %v968_v52  ;;  %v896_v61 = vld [vmem:[%s1336_s26 + $0xa0] sm:$0xf]  ;;  %v1094_v63 = vld [vmem:[%s1336_s26 + $0xa4] sm:$0xf0]  ;;  %v833_v4 = vor.u32 %v1078_v60, %v832_v59 }
  0x35   : > { %620 = vmatpush.bf16.msra.mxu0 %v849_v44  ;;  %v1033_v62 = vor.u32 %v1128_v55, %v1032_v54  ;;  %v960_v0 = vld [vmem:[%s1336_s26 + $0x120] sm:$0xf]  ;;  %v1110_v1 = vld [vmem:[%s1336_s26 + $0x124] sm:$0xf0]  ;;  %v897_v5 = vor.u32 %v1094_v63, %v896_v61  ;;  %v824_v7 = vld [vmem:[%s1336_s26 + $0x10] sm:$0xf] }
  0x36   : > { %633 = vmatpush.bf16.msra.mxu1 %v913_v45  ;;  %v1024_v2 = vld [vmem:[%s1336_s26 + $0x1a0] sm:$0xf]  ;;  %v1126_v3 = vld [vmem:[%s1336_s26 + $0x1a4] sm:$0xf0]  ;;  %v961_v6 = vor.u32 %v1110_v1, %v960_v0  ;;  %v1076_v8 = vld [vmem:[%s1336_s26 + $0x14] sm:$0xf0] }
  0x37   : > { %646 = vmatpush.bf16.msra.mxu2 %v977_v46  ;;  %v888_v9 = vld [vmem:[%s1336_s26 + $0x90] sm:$0xf]  ;;  %v1025_v10 = vor.u32 %v1126_v3, %v1024_v2  ;;  %v1092_v11 = vld [vmem:[%s1336_s26 + $0x94] sm:$0xf0]  ;;  %v825_v16 = vor.u32 %v1076_v8, %v824_v7  ;;  %v816_v17 = vld [vmem:[%s1336_s26] sm:$0xf] }
  0x38   : > { %659 = vmatpush.bf16.msra.mxu3 %v1041_v50  ;;  %v952_v12 = vld [vmem:[%s1336_s26 + $0x110] sm:$0xf]  ;;  %v1108_v13 = vld [vmem:[%s1336_s26 + $0x114] sm:$0xf0]  ;;  %v1074_v18 = vld [vmem:[%s1336_s26 + $0x4] sm:$0xf0]  ;;  %v889_v20 = vor.u32 %v1092_v11, %v888_v9 }
  0x39   : > { %621 = vmatpush.bf16.msra.mxu0 %v841_v56  ;;  %v1016_v14 = vld [vmem:[%s1336_s26 + $0x190] sm:$0xf]  ;;  %v1124_v15 = vld [vmem:[%s1336_s26 + $0x194] sm:$0xf0]  ;;  %v880_v19 = vld [vmem:[%s1336_s26 + $0x80] sm:$0xf]  ;;  %v953_v21 = vor.u32 %v1108_v13, %v952_v12  ;;  %v817_v32 = vor.u32 %v1074_v18, %v816_v17 }
  0x3a   : > { %634 = vmatpush.bf16.msra.mxu1 %v905_v57  ;;  %v1090_v22 = vld [vmem:[%s1336_s26 + $0x84] sm:$0xf0]  ;;  %v944_v23 = vld [vmem:[%s1336_s26 + $0x100] sm:$0xf]  ;;  %v1017_v25 = vor.u32 %v1124_v15, %v1016_v14  ;;  %v1087_v28 = vld [vmem:[%s1336_s26 + $0x74] sm:$0xf] }
  0x3b   : > { %647 = vmatpush.bf16.msra.mxu2 %v969_v58  ;;  %v1106_v24 = vld [vmem:[%s1336_s26 + $0x104] sm:$0xf0]  ;;  %v1008_v26 = vld [vmem:[%s1336_s26 + $0x180] sm:$0xf]  ;;  %v874_v29 = vld [vmem:[%s1336_s26 + $0x78] sm:$0xf0]  ;;  %v881_v37 = vor.u32 %v1090_v22, %v880_v19 }
  0x3c   : > { %660 = vmatpush.bf16.msra.mxu3 %v1033_v62  ;;  %v1122_v27 = vld [vmem:[%s1336_s26 + $0x184] sm:$0xf0]  ;;  %v1103_v30 = vld [vmem:[%s1336_s26 + $0xf4] sm:$0xf]  ;;  %v938_v33 = vld [vmem:[%s1336_s26 + $0xf8] sm:$0xf0]  ;;  %v945_v38 = vor.u32 %v1106_v24, %v944_v23  ;;  %v877_v43 = vor.u32 %v1087_v28, %v874_v29 }
  0x3d   : > { %622 = vmatpush.bf16.msra.mxu0 %v833_v4  ;;  %v212_v31 = vld [vmem:[%s1514_s0 + $0x8] sm:$0xff]  ;;  %v1119_v34 = vld [vmem:[%s1336_s26 + $0x174] sm:$0xf]  ;;  %v1002_v35 = vld [vmem:[%s1336_s26 + $0x178] sm:$0xf0]  ;;  %v1009_v42 = vor.u32 %v1122_v27, %v1008_v26  ;;  %v941_v45 = vor.u32 %v1103_v30, %v938_v33  ;;  %s202_s29 = scalar_select %p201_p6, %s1285_s16, 2 }
  0x3e   : > { %635 = vmatpush.bf16.msra.mxu1 %v897_v5  ;;  %v287_v36 = vunpack.c.l.b16 %v212_v31  ;;  %v1135_v39 = vld [vmem:[%s1336_s26 + $0x1f4] sm:$0xf]  ;;  %v1066_v40 = vld [vmem:[%s1336_s26 + $0x1f8] sm:$0xf0]  ;;  %v288_v41 = vunpack.c.h.b16 %v212_v31  ;;  %v211_v44 = vld [vmem:[%s1514_s0] sm:$0xff]  ;;  %v1005_v46 = vor.u32 %v1119_v34, %v1002_v35  ;;  %s812_s7 = sshll.u32 %s1285_s16, 1 }
  0x3f   : > { %648 = vmatpush.bf16.msra.mxu2 %v961_v6  ;;  %v1085_v47 = vld [vmem:[%s1336_s26 + $0x64] sm:$0xf]  ;;  %v866_v48 = vld [vmem:[%s1336_s26 + $0x68] sm:$0xf0]  ;;  %v285_v50 = vunpack.c.l.b16 %v211_v44  ;;  %v286_v51 = vunpack.c.h.b16 %v211_v44  ;;  %v1069_v52 = vor.u32 %v1135_v39, %v1066_v40  ;;  %v1083_v1 = vld [vmem:[%s1336_s26 + $0x54] sm:$0xf] }
  0x40   : > { %661 = vmatpush.bf16.msra.mxu3 %v1025_v10  ;;  %v1101_v49 = vld [vmem:[%s1336_s26 + $0xe4] sm:$0xf]  ;;  %v930_v53 = vld [vmem:[%s1336_s26 + $0xe8] sm:$0xf0]  ;;  %v1426_v56 = vpack.c.b16 %v287_v36, %v287_v36  ;;  %v1430_v59 = vpack.c.b16 %v288_v41, %v288_v41  ;;  %v869_v61 = vor.u32 %v1085_v47, %v866_v48  ;;  %v858_v2 = vld [vmem:[%s1336_s26 + $0x58] sm:$0xf0] }
  0x41   : > { %623 = vmatpush.bf16.msra.mxu0 %v825_v16  ;;  %v1117_v54 = vld [vmem:[%s1336_s26 + $0x164] sm:$0xf]  ;;  %v994_v55 = vld [vmem:[%s1336_s26 + $0x168] sm:$0xf0]  ;;  %v1432_v60 = vpack.c.b16 %v285_v50, %v285_v50  ;;  %v1434_v62 = vpack.c.b16 %v286_v51, %v286_v51  ;;  %v933_v63 = vor.u32 %v1101_v49, %v930_v53  ;;  %v1099_v3 = vld [vmem:[%s1336_s26 + $0xd4] sm:$0xf]  ;;  %v861_v10 = vor.u32 %v1083_v1, %v858_v2 }
  0x42   : > { %636 = vmatpush.bf16.msra.mxu1 %v889_v20  ;;  %v1133_v57 = vld [vmem:[%s1336_s26 + $0x1e4] sm:$0xf]  ;;  %v1058_v58 = vld [vmem:[%s1336_s26 + $0x1e8] sm:$0xf0]  ;;  %v997_v0 = vor.u32 %v1117_v54, %v994_v55  ;;  %v922_v5 = vld [vmem:[%s1336_s26 + $0xd8] sm:$0xf0] }
  0x43   : > { %649 = vmatpush.bf16.msra.mxu2 %v953_v21  ;;  %v1061_v4 = vor.u32 %v1133_v57, %v1058_v58  ;;  %v1115_v6 = vld [vmem:[%s1336_s26 + $0x154] sm:$0xf]  ;;  %v986_v7 = vld [vmem:[%s1336_s26 + $0x158] sm:$0xf0]  ;;  %v925_v11 = vor.u32 %v1099_v3, %v922_v5  ;;  %v1081_v13 = vld [vmem:[%s1336_s26 + $0x44] sm:$0xf] }
  0x44   : > { %662 = vmatpush.bf16.msra.mxu3 %v1017_v25  ;;  %v1131_v8 = vld [vmem:[%s1336_s26 + $0x1d4] sm:$0xf]  ;;  %v1050_v9 = vld [vmem:[%s1336_s26 + $0x1d8] sm:$0xf0]  ;;  %v989_v12 = vor.u32 %v1115_v6, %v986_v7  ;;  %v850_v14 = vld [vmem:[%s1336_s26 + $0x48] sm:$0xf0] }
  0x45   : > { %624 = vmatpush.bf16.msra.mxu0 %v817_v32  ;;  %v1097_v15 = vld [vmem:[%s1336_s26 + $0xc4] sm:$0xf]  ;;  %v1053_v16 = vor.u32 %v1131_v8, %v1050_v9  ;;  %v914_v17 = vld [vmem:[%s1336_s26 + $0xc8] sm:$0xf0]  ;;  %v853_v22 = vor.u32 %v1081_v13, %v850_v14  ;;  %v1079_v25 = vld [vmem:[%s1336_s26 + $0x34] sm:$0xf] }
  0x46   : > { %637 = vmatpush.bf16.msra.mxu1 %v881_v37  ;;  %v1113_v18 = vld [vmem:[%s1336_s26 + $0x144] sm:$0xf]  ;;  %v978_v19 = vld [vmem:[%s1336_s26 + $0x148] sm:$0xf0]  ;;  %v917_v23 = vor.u32 %v1097_v15, %v914_v17  ;;  %v842_v26 = vld [vmem:[%s1336_s26 + $0x38] sm:$0xf0] }
  0x47   : > { %650 = vmatpush.bf16.msra.mxu2 %v945_v38  ;;  %v1129_v20 = vld [vmem:[%s1336_s26 + $0x1c4] sm:$0xf]  ;;  %v1042_v21 = vld [vmem:[%s1336_s26 + $0x1c8] sm:$0xf0]  ;;  %v981_v24 = vor.u32 %v1113_v18, %v978_v19  ;;  %v1095_v27 = vld [vmem:[%s1336_s26 + $0xb4] sm:$0xf]  ;;  %v845_v34 = vor.u32 %v1079_v25, %v842_v26 }
  0x48   : > { %663 = vmatpush.bf16.msra.mxu3 %v1009_v42  ;;  %625 = vmatmul.bf16.vlgmr.msra.gmra.mxu0 %v1432_v60  ;;  %v1045_v28 = vor.u32 %v1129_v20, %v1042_v21  ;;  %v906_v29 = vld [vmem:[%s1336_s26 + $0xb8] sm:$0xf0]  ;;  %v1111_v30 = vld [vmem:[%s1336_s26 + $0x134] sm:$0xf]  ;;  %v1077_v37 = vld [vmem:[%s1336_s26 + $0x24] sm:$0xf] }
  0x49   : > { %669 = vmatpush.bf16.msrb.mxu0 %v877_v43  ;;  %638 = vmatmul.bf16.vlgmr.msra.gmra.mxu1 %v1434_v62  ;;  %v970_v31 = vld [vmem:[%s1336_s26 + $0x138] sm:$0xf0]  ;;  %v1127_v32 = vld [vmem:[%s1336_s26 + $0x1b4] sm:$0xf]  ;;  %v909_v35 = vor.u32 %v1095_v27, %v906_v29  ;;  %v834_v38 = vld [vmem:[%s1336_s26 + $0x28] sm:$0xf0] }
  0x4a   : > { %682 = vmatpush.bf16.msrb.mxu1 %v941_v45  ;;  %651 = vmatmul.bf16.vlgmr.msra.gmra.mxu2 %v1426_v56  ;;  %v1034_v33 = vld [vmem:[%s1336_s26 + $0x1b8] sm:$0xf0]  ;;  %v973_v36 = vor.u32 %v1111_v30, %v970_v31  ;;  %v1093_v39 = vld [vmem:[%s1336_s26 + $0xa4] sm:$0xf]  ;;  %v898_v41 = vld [vmem:[%s1336_s26 + $0xa8] sm:$0xf0] }
  0x4b   : > { %695 = vmatpush.bf16.msrb.mxu2 %v1005_v46  ;;  %664 = vmatmul.bf16.vlgmr.msra.gmra.mxu3 %v1430_v59  ;;  %v1037_v40 = vor.u32 %v1127_v32, %v1034_v33  ;;  %v1109_v42 = vld [vmem:[%s1336_s26 + $0x124] sm:$0xf]  ;;  %v962_v43 = vld [vmem:[%s1336_s26 + $0x128] sm:$0xf0]  ;;  %v837_v46 = vor.u32 %v1077_v37, %v834_v38  ;;  %v901_v47 = vor.u32 %v1093_v39, %v898_v41  ;;  %v1075_v49 = vld [vmem:[%s1336_s26 + $0x14] sm:$0xf] }
  0x4c   : > { %708 = vmatpush.bf16.msrb.mxu3 %v1069_v52  ;;  %v1125_v44 = vld [vmem:[%s1336_s26 + $0x1a4] sm:$0xf]  ;;  %v1026_v45 = vld [vmem:[%s1336_s26 + $0x1a8] sm:$0xf0]  ;;  %v965_v48 = vor.u32 %v1109_v42, %v962_v43  ;;  %v826_v50 = vld [vmem:[%s1336_s26 + $0x18] sm:$0xf0] }
  0x4d   : > { %670 = vmatpush.bf16.msrb.mxu0 %v869_v61  ;;  %v1091_v51 = vld [vmem:[%s1336_s26 + $0x94] sm:$0xf]  ;;  %v1029_v52 = vor.u32 %v1125_v44, %v1026_v45  ;;  %v890_v53 = vld [vmem:[%s1336_s26 + $0x98] sm:$0xf0]  ;;  %v829_v61 = vor.u32 %v1075_v49, %v826_v50  ;;  %v1073_v1 = vld [vmem:[%s1336_s26 + $0x4] sm:$0xf] }
  0x4e   : > { %683 = vmatpush.bf16.msrb.mxu1 %v933_v63  ;;  %v1107_v54 = vld [vmem:[%s1336_s26 + $0x114] sm:$0xf]  ;;  %v954_v55 = vld [vmem:[%s1336_s26 + $0x118] sm:$0xf0]  ;;  %v893_v63 = vor.u32 %v1091_v51, %v890_v53  ;;  %v818_v2 = vld [vmem:[%s1336_s26 + $0x8] sm:$0xf0] }
  0x4f   : > { %696 = vmatpush.bf16.msrb.mxu2 %v997_v0  ;;  %v1123_v57 = vld [vmem:[%s1336_s26 + $0x194] sm:$0xf]  ;;  %v1018_v58 = vld [vmem:[%s1336_s26 + $0x198] sm:$0xf0]  ;;  %v957_v0 = vor.u32 %v1107_v54, %v954_v55  ;;  %v1089_v3 = vld [vmem:[%s1336_s26 + $0x84] sm:$0xf] }
  0x50   : > { %709 = vmatpush.bf16.msrb.mxu3 %v1061_v4  ;;  %v1021_v4 = vor.u32 %v1123_v57, %v1018_v58  ;;  %v882_v5 = vld [vmem:[%s1336_s26 + $0x88] sm:$0xf0]  ;;  %v1105_v6 = vld [vmem:[%s1336_s26 + $0x104] sm:$0xf]  ;;  %s811_s30 = sshll.u32 %s202_s29, 1  ;;  %p206_p7 = scmp.lt.s32.totalorder %s812_s7, 5 }
  0x51   : > { %671 = vmatpush.bf16.msrb.mxu0 %v861_v10  ;;  %v946_v7 = vld [vmem:[%s1336_s26 + $0x108] sm:$0xf0]  ;;  %v1121_v8 = vld [vmem:[%s1336_s26 + $0x184] sm:$0xf]  ;;  %v821_v10 = vor.u32 %v1073_v1, %v818_v2  ;;  %s204_s6 = scalar_lea.vmem %s1516_s2, %s811_s30 }
  0x52   : > { %684 = vmatpush.bf16.msrb.mxu1 %v925_v11  ;;  %v1010_v9 = vld [vmem:[%s1336_s26 + $0x188] sm:$0xf0]  ;;  %v885_v11 = vor.u32 %v1089_v3, %v882_v5  ;;  %v277_v14 = vld [vmem:[%s204_s6] sm:$0x3]  ;;  %s1526_s7 = smov (!%p206_p7, %s812_s7), 5 }
  0x53   : > { %697 = vmatpush.bf16.msrb.mxu2 %v989_v12  ;;  %v949_v12 = vor.u32 %v1105_v6, %v946_v7  ;;  %v1013_v13 = vor.u32 %v1121_v8, %v1010_v9  ;;  %v279_v15 = vperm.slane %v277_v14, 0  ;;  %s813_s8 = sshll.u32 %s1526_s7, 3 }
  0x54   : > { %710 = vmatpush.bf16.msrb.mxu3 %v1053_v16  ;;  %s209_s11 = scalar_lea.vmem %s1517_s3, %s813_s8 }
  0x55   : > { %672 = vmatpush.bf16.msrb.mxu0 %v853_v22 }
  0x56   : > { %685 = vmatpush.bf16.msrb.mxu1 %v917_v23 }
  0x57   : > { %698 = vmatpush.bf16.msrb.mxu2 %v981_v24  ;;  %v280_v24 = vperm.slane %v277_v14, 1 }
  0x58   : > { %711 = vmatpush.bf16.msrb.mxu3 %v1045_v28 }
  0x59   : > { %673 = vmatpush.bf16.msrb.mxu0 %v845_v34 }
  0x5a   : > { %686 = vmatpush.bf16.msrb.mxu1 %v909_v35 }
  0x5b   : > { %699 = vmatpush.bf16.msrb.mxu2 %v973_v36 }
  0x5c   : > { %712 = vmatpush.bf16.msrb.mxu3 %v1037_v40 }
  0x5d   : > { %674 = vmatpush.bf16.msrb.mxu0 %v837_v46 }
  0x5e   : > { %687 = vmatpush.bf16.msrb.mxu1 %v901_v47 }
  0x5f   : > { %700 = vmatpush.bf16.msrb.mxu2 %v965_v48 }
  0x60   : > { %713 = vmatpush.bf16.msrb.mxu3 %v1029_v52 }
  0x61   : > { %675 = vmatpush.bf16.msrb.mxu0 %v829_v61 }
  0x62   : > { %688 = vmatpush.bf16.msrb.mxu1 %v893_v63 }
  0x63   : > { %701 = vmatpush.bf16.msrb.mxu2 %v957_v0 }
  0x64   : > { %714 = vmatpush.bf16.msrb.mxu3 %v1021_v4 }
  0x65   : > { %676 = vmatpush.bf16.msrb.mxu0 %v821_v10 }
  0x66   : > { %689 = vmatpush.bf16.msrb.mxu1 %v885_v11 }
  0x67   : > { %702 = vmatpush.bf16.msrb.mxu2 %v949_v12 }
  0x68   : > { %715 = vmatpush.bf16.msrb.mxu3 %v1013_v13  ;;  %677 = vmatmul.bf16.vlgmr.msrb.gmra.mxu0 %v1432_v60 }
  0x69   : > { %690 = vmatmul.bf16.vlgmr.msrb.gmra.mxu1 %v1434_v62 }
  0x6a   : > { %703 = vmatmul.bf16.vlgmr.msrb.gmra.mxu2 %v1426_v56 }
  0x6b   : > { %716 = vmatmul.bf16.vlgmr.msrb.gmra.mxu3 %v1430_v59 }
  0xc5   : > { %v626_v16 = vpop.f32.mrf.mxu0 }
  0xc6   : > { %v627_v60 = vadd.f32 %v626_v16, %v279_v15  ;;  %v639_v17 = vpop.f32.mrf.mxu1 }
  0xc8   : > { %v640_v62 = vadd.f32 %v639_v17, %v627_v60 }
  0xcd   : > { %v652_v56 = vpop.f32.mrf.mxu2  ;;  %v628_v20 = vpop.f32.mrf.mxu0 }
  0xce   : > { %v653_v18 = vadd.f32 %v652_v56, %v640_v62  ;;  %v665_v59 = vpop.f32.mrf.mxu3  ;;  %v641_v21 = vpop.f32.mrf.mxu1 }
  0xd0   : > { %v666_v19 = vadd.f32 %v665_v59, %v653_v18 }
  0xd2   : > { %721 = vst [vmem:[%s209_s11] sm:$0xff] %v666_v19 }
  0xd5   : > { %v654_v22 = vpop.f32.mrf.mxu2 }
  0xd6   : > { %v667_v23 = vpop.f32.mrf.mxu3 }
  0xe5   : > { %v678_v25 = vpop.f32.mrf.mxu0 }
  0xe6   : > { %v679_v26 = vadd.f32 %v678_v25, %v280_v24  ;;  %v691_v27 = vpop.f32.mrf.mxu1 }
  0xe8   : > { %v692_v28 = vadd.f32 %v691_v27, %v679_v26 }
  0xed   : > { %v704_v29 = vpop.f32.mrf.mxu2  ;;  %v680_v32 = vpop.f32.mrf.mxu0 }
  0xee   : > { %v705_v30 = vadd.f32 %v704_v29, %v692_v28  ;;  %v717_v31 = vpop.f32.mrf.mxu3  ;;  %v693_v33 = vpop.f32.mrf.mxu1 }
  0xf0   : > { %v718_v34 = vadd.f32 %v717_v31, %v705_v30 }
  0xf2   : > { %722 = vst [vmem:[%s209_s11 + $0x8] sm:$0xff] %v718_v34 }
  0xf5   : > { %v706_v35 = vpop.f32.mrf.mxu2 }
  0xf6   : > { %v719_v36 = vpop.f32.mrf.mxu3 }
  0xf7 PF: > { %p13_p8 = scmp.ge.s32.totalorder %s1288_s17, 5   ;;  %s1521_s12 = smov %s1234_s13 }
  0xf8   : > { %s1522_s13 = smov %s1238_s14  ;;  %s1523_s14 = smov %s1298_s20 }
  0xf9   : > { %s1524_s15 = smov %s1288_s17  ;;  %15 = sbr.rel (!%p13_p8) target bundleno = 3 (0x3), region = 75 }
  0xfe   :  { %745 = vsyncpa [#allocation3], 1 }
  0xff   :  { %747 = vsyncpa [#allocation3 + $0x1], 1 }

</bundles_post_ra>
